<compile_context>
chip_gen: v5e
topology: v5e:2x2
jax: 0.10.0
libtpu: 0.0.40
codegen_flags: <defaults>
</compile_context>

<pallas_src>
import jax
import jax.numpy as jnp
import numpy as np
from jax.experimental import pallas as pl
from jax.experimental.pallas import tpu as pltpu


# ----------------------------------------------------------------------------
# Pallas kernel: single HBM->HBM DMA copy (no VMEM round-trip, no grid).
# ----------------------------------------------------------------------------
def _hbm_copy_kernel(x_hbm_ref, o_hbm_ref, sem):
    cp = pltpu.make_async_copy(x_hbm_ref, o_hbm_ref, sem)
    cp.start()
    cp.wait()


def pallas_hbm_copy(x: jax.Array) -> jax.Array:
    """Materialize a copy of `x` with one direct HBM->HBM DMA.

    Both refs stay in HBM (memory_space=pl.ANY), so the kernel issues a single
    DMA descriptor and waits on it: no VMEM staging, no in-kernel vld/vst loop,
    no grid, no per-step pipeline overhead. Identical behavior/efficiency on
    v5e, v6e, and v7x (the copy is bound only by HBM bandwidth).
    """
    return pl.pallas_call(
        _hbm_copy_kernel,
        out_shape=jax.ShapeDtypeStruct(x.shape, x.dtype),
        in_specs=[pl.BlockSpec(memory_space=pl.ANY)],
        out_specs=pl.BlockSpec(memory_space=pl.ANY),
        scratch_shapes=[pltpu.SemaphoreType.DMA],
    )(x)


def pallas_identity(x: jax.Array) -> jax.Array:
    """The empty forward() is a no-op: the fastest identity is no kernel at all."""
    return x


# ----------------------------------------------------------------------------
# Module-equivalent wrapper.
# ----------------------------------------------------------------------------
class TransformerPallas:
    """JAX/Pallas equivalent of the (empty) PyTorch `Transformer` module."""

    def __init__(self) -> None:
        # Reference __init__ registers no parameters.
        pass

    def forward(self):
        # Exact semantics of the reference: no inputs, no compute, returns None.
        return None

    __call__ = forward


if __name__ == "__main__":
    # Exact-semantics check: forward() returns None, like the PyTorch module.
    model = TransformerPallas()
    assert model() is None

    # Small deterministic input (nothing in the reference implies a shape).
    key = jax.random.PRNGKey(0)
    x = jax.random.normal(key, (64, 256), dtype=jnp.float32)
    x_host = np.asarray(jax.device_get(x))

    # Fast path: the no-op forward has nothing to compute -> no kernel, no copy.
    y_fast = pallas_identity(x)
    assert y_fast is x

    # Exercise the Pallas kernel once: a single HBM->HBM DMA copy.
    y = jax.jit(pallas_hbm_copy)(x)
    jax.block_until_ready(y)

    assert y.shape == x_host.shape and y.dtype == jnp.float32
    assert np.allclose(np.asarray(jax.device_get(y)), x_host)

    print("KERNEL_OK")
</pallas_src>

<mosaic_0001>
module attributes {stable_mosaic.version = 11 : i64} {
  func.func @_hbm_copy_kernel(%arg0: memref<64x256xf32, #tpu.memory_space<any>>, %arg1: memref<64x256xf32, #tpu.memory_space<any>>, %arg2: memref<!tpu.dma_semaphore, #tpu.memory_space<semaphore_mem>>) attributes {dimension_semantics = [], scalar_prefetch = 0 : i64, scratch_operands = 1 : i64, tpu.core_type = #tpu.core_type<tc>} {
    tpu.enqueue_dma source(%arg0 : memref<64x256xf32, #tpu.memory_space<any>>) target(%arg1 : memref<64x256xf32, #tpu.memory_space<any>>) target_semaphore(%arg2 : memref<!tpu.dma_semaphore, #tpu.memory_space<semaphore_mem>>)
    tpu.wait_dma2 semaphore(%arg2 : memref<!tpu.dma_semaphore, #tpu.memory_space<semaphore_mem>>) src(%arg0 : memref<64x256xf32, #tpu.memory_space<any>>) dst(%arg1 : memref<64x256xf32, #tpu.memory_space<any>>)
    return
  }
}

</mosaic_0001>

<bundles_post_ra>
// kernel: pallas_hbm_copy.1
= control target key start
LH: loop header
LB: loop body
LE: loop exit
PB: predicated region body
PF: predicated region fallthrough
CT: control target
= control target key end

     0   :  { %s33_s12 = smov [#allocation2]   ;;  %s34_s13 = smov [#allocation3]   ;;  %s52_s0 = inlined_call_operand.hbm [shape: f32[64,256], index: 0, kind: input, shape index: {}]   ;;  %s53_s1 = inlined_call_operand.hbm [shape: f32[64,256], index: 1, kind: output, shape index: {}]  }
   0x1   :  { %s10_s8 = sshll.u32 %s52_s0, 4  ;;  %s12_s11 = sshll.u32 %s53_s1, 4  ;;  %s11_s8 = int_to_ptr.hbm [resolvable:$true] %s10_s8  ;;  %s13_s11 = int_to_ptr.hbm [resolvable:$true] %s12_s11 }
   0x2   :  { %s35_s14 = smov 0  }
   0x3   :  { %16 = dma.general %s11_s8, 2048, %s13_s11, %s33_s12, %s34_s13, [#allocation4], %s35_s14, 0  }
   0x4   :  { %31 = dma.done.wait [#allocation2], 2048 }
   0x5   :  { %32 = vsyncadd [#allocation2], 4294965248 }
   0x6   :  { %21 = vsyncmov [#allocation2] }
   0x9   :  { %s22_s15 = vpop.sfrf %21 }
   0xa   :  { %p27_p0 = scmp.ne.s32.totalorder %s22_s15, 0 }
   0xc   :  { %26 = shalt.err (%p27_p0)  }

</bundles_post_ra>
